<compile_context>
chip_gen: v7x
topology: tpu7x:2x2x1
jax: 0.10.0
libtpu: 0.0.40
codegen_flags: <defaults>
</compile_context>

<pallas_src>
import jax
import jax.numpy as jnp
from jax.experimental import pallas as pl
from jax.experimental.pallas import tpu as pltpu

LANE = 128                      # lane width (informational)
SUBLANE = 8                     # f32 sublane granularity (second-to-last dim)
MAX_TILE_B = 2048               # per review: amortize per-grid-step overhead
MIN_SPLIT_B = 1024              # split into >=2 grid steps above this (v7x 2-TC sharding)
VMEM_TILE_BUDGET = 12 * 1024 * 1024  # per-tile live f32 buffers budget (fits v5e defaults)


def _round_up(x, m):
    return ((x + m - 1) // m) * m


def _choose_tiling(B, d_in, hidden, num_actions):
    """Pick (b_pad, tile_b) so b_pad is a tile multiple, waste is < 8 rows/tile,
    per-tile VMEM stays within budget, and large batches get >= 2 grid steps."""
    b_pad = _round_up(max(B, 1), SUBLANE)
    # Per-row f32 bytes of per-tile live buffers:
    #   x + out (each double-buffered) + the two hidden-layer temporaries.
    per_row_bytes = 4 * (2 * d_in + 2 * num_actions + 2 * hidden)
    vmem_cap = max(SUBLANE, (VMEM_TILE_BUDGET // per_row_bytes) // SUBLANE * SUBLANE)
    max_tile = min(MAX_TILE_B, vmem_cap)

    if b_pad <= max_tile:
        if b_pad >= MIN_SPLIT_B:
            # two tiles so the "parallel" batch axis can use both v7x TensorCores
            tile_b = _round_up(pl.cdiv(b_pad, 2), SUBLANE)
            b_pad = 2 * tile_b
        else:
            tile_b = b_pad
    else:
        num_tiles = max(2, pl.cdiv(b_pad, max_tile))
        tile_b = _round_up(pl.cdiv(b_pad, num_tiles), SUBLANE)
        b_pad = num_tiles * tile_b
    return b_pad, tile_b


def qnetwork_kernel(x_ref, w1_ref, b1_ref, w2_ref, b2_ref, w3_ref, b3_ref, o_ref):
    # Layer 1: Linear + ReLU (MXU matmul, f32 accumulation; K = d_in, MXU pads internally)
    w1 = w1_ref[...]
    h1 = jnp.dot(x_ref[...].astype(w1.dtype), w1,
                 preferred_element_type=jnp.float32) + b1_ref[...]
    h1 = jnp.maximum(h1, 0.0)
    # Layer 2: Linear + ReLU
    w2 = w2_ref[...]
    h2 = jnp.dot(h1.astype(w2.dtype), w2,
                 preferred_element_type=jnp.float32) + b2_ref[...]
    h2 = jnp.maximum(h2, 0.0)
    # Layer 3: Linear (Q-values, no activation) -- narrow N = num_actions store
    w3 = w3_ref[...]
    o_ref[...] = (jnp.dot(h2.astype(w3.dtype), w3,
                          preferred_element_type=jnp.float32)
                  + b3_ref[...]).astype(o_ref.dtype)


def qnetwork_forward(x, params, num_actions):
    """x: (B, num_inputs) f32. params: weights from init_params (w: (in,out), b: (1,out)).
    Returns (B, num_actions) f32 Q-values."""
    w1, b1 = params["w1"], params["b1"]
    w2, b2 = params["w2"], params["b2"]
    w3, b3 = params["w3"], params["b3"]

    B, d_in = x.shape
    assert w1.shape[0] == d_in
    hidden = w1.shape[1]
    n_act = w3.shape[1]
    assert n_act == num_actions

    b_pad, tile_b = _choose_tiling(B, d_in, hidden, n_act)
    grid = (b_pad // tile_b,)

    # Only batch rows are padded (zeros); obs dim stays at its native width.
    x_p = jnp.pad(x, ((0, b_pad - B), (0, 0))) if b_pad != B else x

    out = pl.pallas_call(
        qnetwork_kernel,
        out_shape=jax.ShapeDtypeStruct((b_pad, n_act), jnp.float32),
        grid=grid,
        in_specs=[
            pl.BlockSpec((tile_b, d_in),   lambda i: (i, 0)),  # x: tiled over batch, full (small) last dim
            pl.BlockSpec((d_in, hidden),   lambda i: (0, 0)),  # w1: VMEM-resident
            pl.BlockSpec((1, hidden),      lambda i: (0, 0)),  # b1
            pl.BlockSpec((hidden, hidden), lambda i: (0, 0)),  # w2
            pl.BlockSpec((1, hidden),      lambda i: (0, 0)),  # b2
            pl.BlockSpec((hidden, n_act),  lambda i: (0, 0)),  # w3: narrow N
            pl.BlockSpec((1, n_act),       lambda i: (0, 0)),  # b3
        ],
        out_specs=pl.BlockSpec((tile_b, n_act), lambda i: (i, 0)),
        compiler_params=pltpu.CompilerParams(
            dimension_semantics=("parallel",),
            vmem_limit_bytes=32 * 1024 * 1024,
        ),
    )(x_p, w1, b1, w2, b2, w3, b3)

    return out[:B] if b_pad != B else out


def init_params(key, num_inputs, num_actions, hidden=128, weight_dtype=jnp.float32):
    """PyTorch nn.Linear-style init (U(-1/sqrt(fan_in), +1/sqrt(fan_in))).
    Weights stored pre-transposed as (in, out); biases as (1, out); NO padding.
    Pass weight_dtype=jnp.bfloat16 on v6e/v7x for the bf16 MXU path (f32 accumulation)."""
    ks = jax.random.split(key, 6)

    def linear(kw, kb, fan_in, fan_out):
        bound = 1.0 / jnp.sqrt(fan_in)
        w = jax.random.uniform(kw, (fan_in, fan_out), jnp.float32, -bound, bound)
        b = jax.random.uniform(kb, (1, fan_out), jnp.float32, -bound, bound)
        return w, b

    w1, b1 = linear(ks[0], ks[1], num_inputs, hidden)
    w2, b2 = linear(ks[2], ks[3], hidden, hidden)
    w3, b3 = linear(ks[4], ks[5], hidden, num_actions)

    w1, w2, w3 = (w.astype(weight_dtype) for w in (w1, w2, w3))  # biases stay f32
    return dict(w1=w1, b1=b1, w2=w2, b2=b2, w3=w3, b3=b3)


def qnetwork_reference(x, p):
    h1 = jnp.maximum(x @ p["w1"].astype(jnp.float32) + p["b1"], 0.0)
    h2 = jnp.maximum(h1 @ p["w2"].astype(jnp.float32) + p["b2"], 0.0)
    return h2 @ p["w3"].astype(jnp.float32) + p["b3"]


if __name__ == "__main__":
    # Small shapes consistent with the module: batch=2, obs_dim=8, num_actions=6.
    B, NUM_INPUTS, NUM_ACTIONS = 2, 8, 6

    key = jax.random.PRNGKey(0)
    k_params, k_x = jax.random.split(key)
    params = init_params(k_params, NUM_INPUTS, NUM_ACTIONS)  # f32 weights: exact check
    x = jax.random.normal(k_x, (B, NUM_INPUTS), jnp.float32)

    out = jax.block_until_ready(qnetwork_forward(x, params, NUM_ACTIONS))
    ref = qnetwork_reference(x, params)
    assert out.shape == (B, NUM_ACTIONS)
    assert jnp.allclose(out, ref, atol=1e-4, rtol=1e-4), "Pallas f32 output mismatch vs reference"

    # bf16 MXU-operand path (recommended on v6e/v7x): looser tolerance vs f32 reference.
    params_bf16 = {k: (v.astype(jnp.bfloat16) if k.startswith("w") else v)
                   for k, v in params.items()}
    out_bf16 = jax.block_until_ready(qnetwork_forward(x, params_bf16, NUM_ACTIONS))
    assert jnp.allclose(out_bf16, ref, atol=1e-1, rtol=1e-1), "Pallas bf16 output mismatch vs reference"

    print("KERNEL_OK")
</pallas_src>

<mosaic_0001>
module attributes {stable_mosaic.version = 11 : i64} {
  func.func @qnetwork_kernel(%arg0: i32, %arg1: memref<8x8xf32, #tpu.memory_space<vmem>>, %arg2: memref<8x128xf32, #tpu.memory_space<vmem>>, %arg3: memref<1x128xf32, #tpu.memory_space<vmem>>, %arg4: memref<128x128xf32, #tpu.memory_space<vmem>>, %arg5: memref<1x128xf32, #tpu.memory_space<vmem>>, %arg6: memref<128x6xf32, #tpu.memory_space<vmem>>, %arg7: memref<1x6xf32, #tpu.memory_space<vmem>>, %arg8: memref<8x6xf32, #tpu.memory_space<vmem>>) attributes {dimension_semantics = [#tpu.dimension_semantics<parallel>], iteration_bounds = array<i64: 1>, scalar_prefetch = 0 : i64, scratch_operands = 0 : i64, tpu.core_type = #tpu.core_type<tc>, window_params = [{transform_indices = @transform_0, window_bounds = array<i64: 8, 8>}, {pipeline_mode = #tpu.pipeline_mode<synchronous>, transform_indices = @transform_1, window_bounds = array<i64: 8, 128>}, {pipeline_mode = #tpu.pipeline_mode<synchronous>, transform_indices = @transform_2, window_bounds = array<i64: 1, 128>}, {pipeline_mode = #tpu.pipeline_mode<synchronous>, transform_indices = @transform_3, window_bounds = array<i64: 128, 128>}, {pipeline_mode = #tpu.pipeline_mode<synchronous>, transform_indices = @transform_4, window_bounds = array<i64: 1, 128>}, {pipeline_mode = #tpu.pipeline_mode<synchronous>, transform_indices = @transform_5, window_bounds = array<i64: 128, 6>}, {pipeline_mode = #tpu.pipeline_mode<synchronous>, transform_indices = @transform_6, window_bounds = array<i64: 1, 6>}, {transform_indices = @transform_7, window_bounds = array<i64: 8, 6>}]} {
    %c0 = arith.constant 0 : index
    %c0_0 = arith.constant 0 : index
    %0 = vector.load %arg2[%c0, %c0_0] : memref<8x128xf32, #tpu.memory_space<vmem>>, vector<8x128xf32>
    %c0_1 = arith.constant 0 : index
    %c0_2 = arith.constant 0 : index
    %1 = vector.load %arg1[%c0_1, %c0_2] : memref<8x8xf32, #tpu.memory_space<vmem>>, vector<8x8xf32>
    %cst = arith.constant dense<0.000000e+00> : vector<8x128xf32>
    %2 = tpu.matmul %1, %0, %cst {dimension_numbers = #tpu.dot_dimension_numbers<[1], [0], [0], [1], [0, 0, 1, 1], [], []>} : vector<8x8xf32>, vector<8x128xf32>, vector<8x128xf32> -> vector<8x128xf32>
    %c0_3 = arith.constant 0 : index
    %c0_4 = arith.constant 0 : index
    %3 = vector.load %arg3[%c0_3, %c0_4] : memref<1x128xf32, #tpu.memory_space<vmem>>, vector<1x128xf32>
    %4 = vector.broadcast %3 : vector<1x128xf32> to vector<8x128xf32>
    %5 = arith.addf %2, %4 : vector<8x128xf32>
    %cst_5 = arith.constant 0.000000e+00 : f32
    %6 = vector.broadcast %cst_5 : f32 to vector<8x128xf32>
    %7 = arith.maximumf %5, %6 : vector<8x128xf32>
    %c0_6 = arith.constant 0 : index
    %c0_7 = arith.constant 0 : index
    %8 = vector.load %arg4[%c0_6, %c0_7] : memref<128x128xf32, #tpu.memory_space<vmem>>, vector<128x128xf32>
    %cst_8 = arith.constant dense<0.000000e+00> : vector<8x128xf32>
    %9 = tpu.matmul %7, %8, %cst_8 {dimension_numbers = #tpu.dot_dimension_numbers<[1], [0], [0], [1], [0, 0, 1, 1], [], []>} : vector<8x128xf32>, vector<128x128xf32>, vector<8x128xf32> -> vector<8x128xf32>
    %c0_9 = arith.constant 0 : index
    %c0_10 = arith.constant 0 : index
    %10 = vector.load %arg5[%c0_9, %c0_10] : memref<1x128xf32, #tpu.memory_space<vmem>>, vector<1x128xf32>
    %11 = vector.broadcast %10 : vector<1x128xf32> to vector<8x128xf32>
    %12 = arith.addf %9, %11 : vector<8x128xf32>
    %cst_11 = arith.constant 0.000000e+00 : f32
    %13 = vector.broadcast %cst_11 : f32 to vector<8x128xf32>
    %14 = arith.maximumf %12, %13 : vector<8x128xf32>
    %c0_12 = arith.constant 0 : index
    %c0_13 = arith.constant 0 : index
    %15 = vector.load %arg6[%c0_12, %c0_13] : memref<128x6xf32, #tpu.memory_space<vmem>>, vector<128x6xf32>
    %cst_14 = arith.constant dense<0.000000e+00> : vector<8x6xf32>
    %16 = tpu.matmul %14, %15, %cst_14 {dimension_numbers = #tpu.dot_dimension_numbers<[1], [0], [0], [1], [0, 0, 1, 1], [], []>} : vector<8x128xf32>, vector<128x6xf32>, vector<8x6xf32> -> vector<8x6xf32>
    %c0_15 = arith.constant 0 : index
    %c0_16 = arith.constant 0 : index
    %17 = vector.load %arg7[%c0_15, %c0_16] : memref<1x6xf32, #tpu.memory_space<vmem>>, vector<1x6xf32>
    %18 = vector.broadcast %17 : vector<1x6xf32> to vector<8x6xf32>
    %19 = arith.addf %16, %18 : vector<8x6xf32>
    %c0_17 = arith.constant 0 : index
    %c0_18 = arith.constant 0 : index
    %20 = vector.load %arg8[%c0_17, %c0_18] : memref<8x6xf32, #tpu.memory_space<vmem>>, vector<8x6xf32>
    tpu.vector_store %arg8[%c0_17, %c0_18], %19 {strides = array<i32>} : memref<8x6xf32, #tpu.memory_space<vmem>>, vector<8x6xf32>,
    return
  }
  func.func @transform_0(%arg0: i32) -> (i32, i32) {
    %c0_i32 = arith.constant 0 : i32
    %c0_i32_0 = arith.constant 0 : i32
    return %arg0, %c0_i32 : i32, i32
  }
  func.func @transform_1(%arg0: i32) -> (i32, i32) {
    %c0_i32 = arith.constant 0 : i32
    %c0_i32_0 = arith.constant 0 : i32
    %c0_i32_1 = arith.constant 0 : i32
    return %c0_i32, %c0_i32_0 : i32, i32
  }
  func.func @transform_2(%arg0: i32) -> (i32, i32) {
    %c0_i32 = arith.constant 0 : i32
    %c0_i32_0 = arith.constant 0 : i32
    %c0_i32_1 = arith.constant 0 : i32
    return %c0_i32, %c0_i32_0 : i32, i32
  }
  func.func @transform_3(%arg0: i32) -> (i32, i32) {
    %c0_i32 = arith.constant 0 : i32
    %c0_i32_0 = arith.constant 0 : i32
    %c0_i32_1 = arith.constant 0 : i32
    return %c0_i32, %c0_i32_0 : i32, i32
  }
  func.func @transform_4(%arg0: i32) -> (i32, i32) {
    %c0_i32 = arith.constant 0 : i32
    %c0_i32_0 = arith.constant 0 : i32
    %c0_i32_1 = arith.constant 0 : i32
    return %c0_i32, %c0_i32_0 : i32, i32
  }
  func.func @transform_5(%arg0: i32) -> (i32, i32) {
    %c0_i32 = arith.constant 0 : i32
    %c0_i32_0 = arith.constant 0 : i32
    %c0_i32_1 = arith.constant 0 : i32
    return %c0_i32, %c0_i32_0 : i32, i32
  }
  func.func @transform_6(%arg0: i32) -> (i32, i32) {
    %c0_i32 = arith.constant 0 : i32
    %c0_i32_0 = arith.constant 0 : i32
    %c0_i32_1 = arith.constant 0 : i32
    return %c0_i32, %c0_i32_0 : i32, i32
  }
  func.func @transform_7(%arg0: i32) -> (i32, i32) {
    %c0_i32 = arith.constant 0 : i32
    %c0_i32_0 = arith.constant 0 : i32
    return %arg0, %c0_i32 : i32, i32
  }
}

</mosaic_0001>

<bundles_post_ra>
// kernel: tpu_custom_call.1
= control target key start
LH: loop header
LB: loop body
LE: loop exit
PB: predicated region body
PF: predicated region fallthrough
CT: control target
= control target key end

     0   :  { %12 = vsyncpa [#allocation3], 0  ;;  %s739_s0 = inlined_call_operand.vmem [shape: f32[8,8], index: 0, kind: input, shape index: {}]   ;;  %s740_s1 = inlined_call_operand.hbm [shape: f32[8,128], index: 1, kind: input, shape index: {}]   ;;  %s741_s2 = inlined_call_operand.vmem [shape: f32[1,128], index: 2, kind: input, shape index: {}]   ;;  %s742_s3 = inlined_call_operand.vmem [shape: f32[128,128], index: 3, kind: input, shape index: {}]   ;;  %s743_s4 = inlined_call_operand.vmem [shape: f32[1,128], index: 4, kind: input, shape index: {}]   ;;  %s744_s5 = inlined_call_operand.vmem [shape: f32[128,6], index: 5, kind: input, shape index: {}]   ;;  %s745_s6 = inlined_call_operand.vmem [shape: f32[1,6], index: 6, kind: input, shape index: {}]   ;;  %s746_s7 = inlined_call_operand.hbm [shape: f32[8,6], index: 7, kind: output, shape index: {}]  }
   0x1   :  { %13 = vsyncpa [#allocation4], 0  ;;  %s543_s24 = smov [#allocation2]   ;;  %s495_s28 = scalar_lea.hbm %s740_s1, 128 }
   0x2   :  { %s22_s25 = sshll.u32 %s543_s24, 4  ;;  %p496_p0 = scmp.ne.s32.totalorder %s740_s1, %s495_s28  ;;  %s23_s25 = int_to_ptr.vmem [resolvable:$true] %s22_s25 }
   0x3   :  { %p499_p1 = scmp.lt.u32.totalorder %s495_s28, %s740_s1 }
   0x5   :  { %p501_p2 = pnand %p499_p1, %p496_p0 }
   0x7   :  { %504 = shalt.err (!%p501_p2)
}
   0x8   :  { %s505_s10 = scalar_lea.vmem %s23_s25, 128  ;;  %p510_p4 = scmp.lt.s32.totalorder %s23_s25, %s23_s25 }
   0x9   :  { %p506_p3 = scmp.ne.s32.totalorder %s23_s25, %s505_s10  ;;  %p511_p5 = scmp.lt.s32.totalorder %s505_s10, %s505_s10 }
   0xb   :  { %p512_p6 = por %p511_p5, %p510_p4 }
   0xd   :  { %p513_p7 = pnand %p512_p6, %p506_p3 }
   0xf   :  { %516 = shalt.err (!%p513_p7)
}
  0x10   :  { %25 = dma.hbm_to_vmem [thread:$0]  %s740_s1, 128, %s23_s25, [#allocation3]  }
  0x11   :  { %539 = dma.done.wait [#allocation3], 128  }
  0x12   :  { %540 = vsyncadd [#allocation3], 4294967168  ;;  %v544_v0 = vmov 0.0   ;;  %vm545_vm0 = vmmov 0   ;;  %v546_v1 = vmov 0.0|0.0   ;;  %vm48_vm1 = vcmask 64512  }
  0x13   :  { %367 = vmatprep.subr.mxu0 %v544_v0  ;;  %369 = vmatprep.mubr.msk.f32.mxu0 %vm545_vm0, %v544_v0  ;;  %v39_v2 = vld [vmem:[#allocation2] sm:$0xff]  ;;  %v124_v5 = vld [vmem:[%s742_s3 + $0x8] sm:$0xff]  ;;  %v125_v6 = vld [vmem:[%s742_s3 + $0x10] sm:$0xff]  ;;  %s547_s30 = smov [#allocation5]   ;;  %vm310_vm2 = vcmask 48128  }
  0x14   :  { %442 = vmatprep.subr.bf16.mxu1 %v546_v1  ;;  %404 = vmatprep.mubr.msk.f32.mxu1 %vm545_vm0, %v544_v0  ;;  %v40_v3 = vld [vmem:[%s739_s0] sm:$0xff]  ;;  %v126_v7 = vld [vmem:[%s742_s3 + $0x18] sm:$0xff]  ;;  %v128_v11 = vld [vmem:[%s742_s3 + $0x28] sm:$0xff]  ;;  %s318_s8 = sshll.u32 %s547_s30, 4  ;;  %s319_s8 = int_to_ptr.vmem [resolvable:$true] %s318_s8 }
  0x15   :  { %v123_v4 = vld [vmem:[%s742_s3] sm:$0xff]  ;;  %368 = vmatpush3.msra.mxu0 %v39_v2  ;;  %v446_v9 = vpack.c.bf16 %v126_v7, %v125_v6  ;;  %v129_v13 = vld [vmem:[%s742_s3 + $0x30] sm:$0xff]  ;;  %v130_v14 = vld [vmem:[%s742_s3 + $0x38] sm:$0xff]  ;;  %p522_p9 = scmp.lt.s32.totalorder %s319_s8, %s319_s8 }
  0x16   :  { %370 = vmatmul.mubr.msk.f32.vlgmr.msra.gmra.mrb[0].mxu0 %vm48_vm1, %v40_v3  ;;  %v443_v8 = vpack.c.bf16 %v124_v5, %v123_v4  ;;  %466 = vmatprep.subr.bf16.mxu0 %v546_v1  ;;  %v127_v10 = vld [vmem:[%s742_s3 + $0x20] sm:$0xff]  ;;  %v452_v15 = vpack.c.bf16 %v130_v14, %v129_v13  ;;  %v132_v17 = vld [vmem:[%s742_s3 + $0x48] sm:$0xff]  ;;  %v133_v19 = vld [vmem:[%s742_s3 + $0x50] sm:$0xff] }
  0x17   :  { %439 = vmatprep.mubr.msk.f32.mxu0 %vm545_vm0, %v544_v0  ;;  %v449_v12 = vpack.c.bf16 %v128_v11, %v127_v10  ;;  %v131_v16 = vld [vmem:[%s742_s3 + $0x40] sm:$0xff]  ;;  %v134_v20 = vld [vmem:[%s742_s3 + $0x58] sm:$0xff]  ;;  %v136_v23 = vld [vmem:[%s742_s3 + $0x68] sm:$0xff] }
  0x18   :  { %444 = vmatpush3.bf16.msra.mxu1 %v443_v8  ;;  %v455_v18 = vpack.c.bf16 %v132_v17, %v131_v16  ;;  %v458_v21 = vpack.c.bf16 %v134_v20, %v133_v19  ;;  %v135_v22 = vld [vmem:[%s742_s3 + $0x60] sm:$0xff]  ;;  %v137_v25 = vld [vmem:[%s742_s3 + $0x70] sm:$0xff]  ;;  %v138_v26 = vld [vmem:[%s742_s3 + $0x78] sm:$0xff] }
  0x19   :  { %445 = vmatprep.subr.bf16.mxu1 %v546_v1  ;;  %v461_v24 = vpack.c.bf16 %v136_v23, %v135_v22  ;;  %v464_v27 = vpack.c.bf16 %v138_v26, %v137_v25  ;;  %v217_v28 = vld [vmem:[%s744_s5] sm:$0xff]  ;;  %v218_v29 = vld [vmem:[%s744_s5 + $0x8] sm:$0xff]  ;;  %v219_v30 = vld [vmem:[%s744_s5 + $0x10] sm:$0xff] }
  0x1a   :  { %v467_v31 = vpack.c.bf16 %v218_v29, %v217_v28  ;;  %v220_v32 = vld [vmem:[%s744_s5 + $0x18] sm:$0xff]  ;;  %v221_v34 = vld [vmem:[%s744_s5 + $0x20] sm:$0xff]  ;;  %v222_v35 = vld [vmem:[%s744_s5 + $0x28] sm:$0xff] }
  0x1b   :  { %v470_v33 = vpack.c.bf16 %v220_v32, %v219_v30  ;;  %v473_v36 = vpack.c.bf16 %v222_v35, %v221_v34  ;;  %v223_v37 = vld [vmem:[%s744_s5 + $0x30] sm:$0xff]  ;;  %v224_v38 = vld [vmem:[%s744_s5 + $0x38] sm:$0xff]  ;;  %v225_v40 = vld [vmem:[%s744_s5 + $0x40] sm:$0xff] }
  0x1c   :  { %447 = vmatpush3.bf16.msra.mxu1 %v446_v9  ;;  %468 = vmatpush3.bf16.msra.mxu0 %v467_v31  ;;  %v476_v39 = vpack.c.bf16 %v224_v38, %v223_v37  ;;  %v226_v41 = vld [vmem:[%s744_s5 + $0x48] sm:$0xff]  ;;  %v227_v43 = vld [vmem:[%s744_s5 + $0x50] sm:$0xff]  ;;  %v228_v44 = vld [vmem:[%s744_s5 + $0x58] sm:$0xff] }
  0x1d   :  { %448 = vmatprep.subr.bf16.mxu1 %v546_v1  ;;  %469 = vmatprep.subr.bf16.mxu0 %v546_v1  ;;  %v479_v42 = vpack.c.bf16 %v226_v41, %v225_v40  ;;  %v482_v45 = vpack.c.bf16 %v228_v44, %v227_v43  ;;  %v229_v46 = vld [vmem:[%s744_s5 + $0x60] sm:$0xff]  ;;  %v230_v47 = vld [vmem:[%s744_s5 + $0x68] sm:$0xff]  ;;  %v231_v54 = vld [vmem:[%s744_s5 + $0x70] sm:$0xff] }
  0x1e   :  { %v485_v48 = vpack.c.bf16 %v230_v47, %v229_v46  ;;  %v327_v49 = vld [vmem:[%s741_s2] ss:$0 sm:$0xff]  ;;  %v232_v55 = vld [vmem:[%s744_s5 + $0x78] sm:$0xff]  ;;  %s517_s5 = scalar_lea.vmem %s319_s8, 128 }
  0x1f   :  { %v488_v56 = vpack.c.bf16 %v232_v55, %v231_v54  ;;  %v329_v57 = vld [vmem:[%s743_s4] ss:$0 sm:$0xff]  ;;  %p518_p8 = scmp.ne.s32.totalorder %s319_s8, %s517_s5  ;;  %p523_p10 = scmp.lt.s32.totalorder %s517_s5, %s517_s5 }
  0x20   :  { %450 = vmatpush3.bf16.msra.mxu1 %v449_v12  ;;  %471 = vmatpush3.bf16.msra.mxu0 %v470_v33  ;;  %v330_v62 = vld [vmem:[%s745_s6] ss:$0 sm:$0xff] }
  0x21   :  { %451 = vmatprep.subr.bf16.mxu1 %v546_v1  ;;  %472 = vmatprep.subr.bf16.mxu0 %v546_v1  ;;  %p524_p11 = por %p523_p10, %p522_p9 }
  0x23   :  { %p525_p12 = pnand %p524_p11, %p518_p8 }
  0x24   :  { %453 = vmatpush3.bf16.msra.mxu1 %v452_v15  ;;  %474 = vmatpush3.bf16.msra.mxu0 %v473_v36 }
  0x25   :  { %454 = vmatprep.subr.bf16.mxu1 %v546_v1  ;;  %475 = vmatprep.subr.bf16.mxu0 %v546_v1 }
  0x28   :  { %456 = vmatpush3.bf16.msra.mxu1 %v455_v18  ;;  %477 = vmatpush3.bf16.msra.mxu0 %v476_v39 }
  0x29   :  { %457 = vmatprep.subr.bf16.mxu1 %v546_v1  ;;  %478 = vmatprep.subr.bf16.mxu0 %v546_v1 }
  0x2c   :  { %459 = vmatpush3.bf16.msra.mxu1 %v458_v21  ;;  %480 = vmatpush3.bf16.msra.mxu0 %v479_v42 }
  0x2d   :  { %460 = vmatprep.subr.bf16.mxu1 %v546_v1  ;;  %481 = vmatprep.subr.bf16.mxu0 %v546_v1 }
  0x30   :  { %462 = vmatpush3.bf16.msra.mxu1 %v461_v24  ;;  %483 = vmatpush3.bf16.msra.mxu0 %v482_v45 }
  0x31   :  { %463 = vmatprep.subr.bf16.mxu1 %v546_v1  ;;  %484 = vmatprep.subr.bf16.mxu0 %v546_v1 }
  0x34   :  { %465 = vmatpush3.bf16.msra.mxu1 %v464_v27  ;;  %486 = vmatpush3.bf16.msra.mxu0 %v485_v48 }
  0x35   :  { %487 = vmatprep.subr.bf16.mxu0 %v546_v1 }
  0x38   :  { %489 = vmatpush3.bf16.msra.mxu0 %v488_v56 }
  0xe9   :  { %v118_v50 = vpop.f32.mrb[0].mxu0 }
  0xea   :  { %v119_v51 = vadd.f32 %v327_v49, %v118_v50  ;;  %v371_v52 = vpop.f32.mrb[1].mxu0 }
  0xec   :  { %v122_v53 = vmax.f32 %v119_v51, 0.0 }
  0xee   :  { %405 = vmatmul.mubr.f32.vlgmr.msra.gmra.mrb[0].mxu1 %v122_v53 }
 0x1c1   :  { %v212_v58 = vpop.f32.mrb[0].mxu1 }
 0x1c2   :  { %v213_v59 = vadd.f32 %v329_v57, %v212_v58  ;;  %v406_v60 = vpop.f32.mrb[1].mxu1 }
 0x1c4   :  { %v216_v61 = vmax.f32 %v213_v59, 0.0 }
 0x1c6   :  { %440 = vmatmul.mubr.f32.vlgmr.msra.gmra.mrb[2].mxu0 %v216_v61 }
 0x299   :  { %v306_v63 = vpop.f32.mrb[2].mxu0 }
 0x29a   :  { %v307_v0 = vadd.f32 %v330_v62, %v306_v63  ;;  %v441_v1 = vpop.f32.mrb[3].mxu0 }
 0x29c   :  { %311 = vst.msk [vmem:[#allocation5] sm:$0xff] %vm310_vm2, %v307_v0 }
 0x29d   :  { %528 = shalt.err (!%p525_p12)
}
 0x29e   :  { %s529_s10 = scalar_lea.hbm %s746_s7, 128 }
 0x29f   :  { %p530_p13 = scmp.ne.s32.totalorder %s746_s7, %s529_s10  ;;  %p533_p0 = scmp.lt.u32.totalorder %s529_s10, %s746_s7 }
 0x2a1   :  { %p535_p1 = pnand %p533_p0, %p530_p13 }
 0x2a3   :  { %538 = shalt.err (!%p535_p1)
}
 0x2a4   :  { %321 = dma.vmem_to_hbm [thread:$0]  %s319_s8, 128, %s746_s7, [#allocation4]  }
 0x2a5   :  { %541 = dma.done.wait [#allocation4], 128  }
 0x2a6   :  { %542 = vsyncadd [#allocation4], 4294967168 }
 0x2a7   :  { %325 = vsyncpa [#allocation3], 1 }
 0x2a8   :  { %326 = vsyncpa [#allocation4], 1 }

</bundles_post_ra>
